<compile_context>
chip_gen: v7x
topology: tpu7x:2x2x1
jax: 0.10.0
libtpu: 0.0.40
codegen_flags: <defaults>
</compile_context>

<pallas_src>
import functools

import jax
import jax.numpy as jnp
from jax.experimental import pallas as pl
from jax.experimental.pallas import tpu as pltpu


def _round_up(n: int, m: int) -> int:
    return ((n + m - 1) // m) * m


def _pick_block(total: int, preferred: int, align: int = 8) -> int:
    """Pick a batch tile: as large as possible, but shrink (by halving) when
    that cuts the padded total by >10%, so odd batch sizes are not over-padded."""
    total_a = _round_up(max(total, 1), align)
    if total_a <= preferred:
        return total_a
    best = preferred
    best_padded = _round_up(total, best)
    cand = preferred
    while cand > align:
        nxt = max(align, cand // 2)
        padded = _round_up(total, nxt)
        if padded < 0.9 * best_padded:
            best, best_padded, cand = nxt, padded, nxt
        else:
            break
    return best


def _cheby_kan_kernel(x_ref, w_ref, o_ref, *, degree: int):
    # x_ref: (TB, I)   w_ref: ((degree+1)*I, TO)   o_ref: (TB, TO)
    x = jnp.tanh(x_ref[...].astype(jnp.float32))

    # Chebyshev recurrence: T_0 = 1, T_1 = x, T_d = 2 x T_{d-1} - T_{d-2}.
    terms = [jnp.ones_like(x), x]
    for _ in range(2, degree + 1):                      # static unroll
        terms.append(2.0 * x * terms[-1] - terms[-2])

    # Pack all degree terms along the lane axis -> one fused K=(d+1)*I matmul.
    t = jnp.concatenate(terms, axis=-1)                 # (TB, (d+1)*I)
    acc = jnp.dot(t, w_ref[...].astype(jnp.float32),
                  preferred_element_type=jnp.float32)   # (TB, TO)
    o_ref[...] = acc.astype(o_ref.dtype)


def cheby_kan_forward(x, cheby_coeffs, *, degree: int,
                      block_b: int = 512, block_o: int = 512):
    """Pallas implementation of ChebyKANLayer.forward.

    x:            any shape whose reshape(-1, input_dim) is valid
                  (1-D inputs follow the PyTorch "modulus" path).
    cheby_coeffs: (input_dim, output_dim, degree + 1)
    returns:      (B, output_dim)  (or (output_dim,) if x was 1-D)
    """
    input_dim, output_dim, dp1 = cheby_coeffs.shape
    assert dp1 == degree + 1 and degree >= 1

    is_modulus = x.ndim == 1
    x2 = jnp.reshape(x, (-1, input_dim)).astype(jnp.float32)
    b = x2.shape[0]

    # Batch tile selection + zero padding to a whole number of tiles.
    tb = _pick_block(b, block_b, align=8)
    pad_b = (-b) % tb
    if pad_b:
        x2 = jnp.pad(x2, ((0, pad_b), (0, 0)))
    bp = x2.shape[0]

    # Weights: (I, O, D+1) -> (D+1, I, O) -> ((D+1)*I, O); degree-major layout
    # matching the concatenation of Chebyshev terms inside the kernel.
    w = jnp.transpose(cheby_coeffs.astype(jnp.float32), (2, 0, 1))
    w = w.reshape(dp1 * input_dim, output_dim)

    # Zero-pad the output dimension to a lane-dense multiple of 128, then tile.
    op = _round_up(output_dim, 128)
    if op != output_dim:
        w = jnp.pad(w, ((0, 0), (0, op - output_dim)))
    to = min(_round_up(min(block_o, op), 128), op)
    pad_o = (-op) % to
    if pad_o:
        w = jnp.pad(w, ((0, 0), (0, pad_o)))
        op = op + pad_o

    grid = (bp // tb, op // to)
    out = pl.pallas_call(
        functools.partial(_cheby_kan_kernel, degree=degree),
        out_shape=jax.ShapeDtypeStruct((bp, op), jnp.float32),
        grid_spec=pltpu.PrefetchScalarGridSpec(
            num_scalar_prefetch=0,
            grid=grid,
            in_specs=[
                # x tile: batch-tiled, grid-invariant along the output axis.
                pl.BlockSpec((tb, input_dim), lambda i, j: (i, 0)),
                # Weights: grid-invariant along batch, tiled along output.
                pl.BlockSpec((dp1 * input_dim, to), lambda i, j: (0, j)),
            ],
            out_specs=pl.BlockSpec((tb, to), lambda i, j: (i, j)),
        ),
        compiler_params=pltpu.CompilerParams(
            dimension_semantics=("parallel", "parallel")),
    )(x2, w)

    out = out[:b, :output_dim]
    if is_modulus:
        out = out[0]
    return out


def cheby_kan_reference(x, cheby_coeffs, *, degree: int):
    """Pure-JAX reference matching the PyTorch forward."""
    input_dim = cheby_coeffs.shape[0]
    is_modulus = x.ndim == 1
    x2 = jnp.reshape(x, (-1, input_dim))
    x2 = jnp.tanh(x2)
    cheby = [jnp.ones_like(x2), x2]
    for i in range(2, degree + 1):
        cheby.append(2.0 * x2 * cheby[i - 1] - cheby[i - 2])
    cheby = jnp.stack(cheby, axis=-1)                # (B, I, D+1)
    y = jnp.einsum('bid,iod->bo', cheby, cheby_coeffs)
    if is_modulus:
        y = y[0]
    return y


if __name__ == "__main__":
    input_dim = 32
    output_dim = 16
    degree = 4
    batch = 16

    key = jax.random.PRNGKey(0)
    k_x, k_w = jax.random.split(key)

    # nn.init.normal_(coeffs, mean=0, std=1/(input_dim*(degree+1)))
    std = 1.0 / (input_dim * (degree + 1))
    cheby_coeffs = std * jax.random.normal(
        k_w, (input_dim, output_dim, degree + 1), dtype=jnp.float32)

    x = jax.random.normal(k_x, (batch, input_dim), dtype=jnp.float32)

    y = cheby_kan_forward(x, cheby_coeffs, degree=degree)
    y = jax.block_until_ready(y)
    y_ref = cheby_kan_reference(x, cheby_coeffs, degree=degree)
    assert y.shape == (batch, output_dim)
    assert jnp.allclose(y, y_ref, atol=2e-5, rtol=2e-5)

    # 1-D ("modulus") path.
    x1d = jax.random.normal(jax.random.PRNGKey(1), (input_dim,), dtype=jnp.float32)
    y1d = jax.block_until_ready(cheby_kan_forward(x1d, cheby_coeffs, degree=degree))
    y1d_ref = cheby_kan_reference(x1d, cheby_coeffs, degree=degree)
    assert y1d.shape == (output_dim,)
    assert jnp.allclose(y1d, y1d_ref, atol=2e-5, rtol=2e-5)

    # Larger, non-aligned batch to hit the adaptive-tile / multi-step-grid path.
    xl = jax.random.normal(jax.random.PRNGKey(2), (1030, input_dim), dtype=jnp.float32)
    yl = jax.block_until_ready(cheby_kan_forward(xl, cheby_coeffs, degree=degree))
    yl_ref = cheby_kan_reference(xl, cheby_coeffs, degree=degree)
    assert yl.shape == (1030, output_dim)
    assert jnp.allclose(yl, yl_ref, atol=2e-5, rtol=2e-5)

    # Wide output_dim to exercise the output-tiling grid axis.
    wide_o = 300
    cw = std * jax.random.normal(
        jax.random.PRNGKey(3), (input_dim, wide_o, degree + 1), dtype=jnp.float32)
    xw = jax.random.normal(jax.random.PRNGKey(4), (64, input_dim), dtype=jnp.float32)
    yw = jax.block_until_ready(
        cheby_kan_forward(xw, cw, degree=degree, block_o=128))
    yw_ref = cheby_kan_reference(xw, cw, degree=degree)
    assert yw.shape == (64, wide_o)
    assert jnp.allclose(yw, yw_ref, atol=2e-5, rtol=2e-5)

    print("KERNEL_OK")
</pallas_src>

<mosaic_0001>
module attributes {stable_mosaic.version = 11 : i64} {
  func.func @_cheby_kan_kernel(%arg0: i32, %arg1: i32, %arg2: memref<16x32xf32, #tpu.memory_space<vmem>>, %arg3: memref<160x128xf32, #tpu.memory_space<vmem>>, %arg4: memref<16x128xf32, #tpu.memory_space<vmem>>) attributes {dimension_semantics = [#tpu.dimension_semantics<parallel>, #tpu.dimension_semantics<parallel>], iteration_bounds = array<i64: 1, 1>, scalar_prefetch = 0 : i64, scratch_operands = 0 : i64, tpu.core_type = #tpu.core_type<tc>, window_params = [{transform_indices = @transform_0, window_bounds = array<i64: 16, 32>}, {transform_indices = @transform_1, window_bounds = array<i64: 160, 128>}, {transform_indices = @transform_2, window_bounds = array<i64: 16, 128>}]} {
    %c0 = arith.constant 0 : index
    %c0_0 = arith.constant 0 : index
    %0 = vector.load %arg2[%c0, %c0_0] : memref<16x32xf32, #tpu.memory_space<vmem>>, vector<16x32xf32>
    %1 = math.tanh %0 : vector<16x32xf32>
    %cst = arith.constant 1.000000e+00 : f32
    %2 = vector.broadcast %cst : f32 to vector<16x32xf32>
    %cst_1 = arith.constant 2.000000e+00 : f32
    %3 = vector.broadcast %cst_1 : f32 to vector<16x32xf32>
    %4 = arith.mulf %3, %1 : vector<16x32xf32>
    %5 = arith.mulf %4, %1 : vector<16x32xf32>
    %6 = arith.subf %5, %2 : vector<16x32xf32>
    %cst_2 = arith.constant 2.000000e+00 : f32
    %7 = vector.broadcast %cst_2 : f32 to vector<16x32xf32>
    %8 = arith.mulf %7, %1 : vector<16x32xf32>
    %9 = arith.mulf %8, %6 : vector<16x32xf32>
    %10 = arith.subf %9, %1 : vector<16x32xf32>
    %cst_3 = arith.constant 2.000000e+00 : f32
    %11 = vector.broadcast %cst_3 : f32 to vector<16x32xf32>
    %12 = arith.mulf %11, %1 : vector<16x32xf32>
    %13 = arith.mulf %12, %10 : vector<16x32xf32>
    %14 = arith.subf %13, %6 : vector<16x32xf32>
    %15 = tpu.concatenate %2, %1, %6, %10, %14 in 1 : vector<16x32xf32>, vector<16x32xf32>, vector<16x32xf32>, vector<16x32xf32>, vector<16x32xf32> -> vector<16x160xf32>
    %c0_4 = arith.constant 0 : index
    %c0_5 = arith.constant 0 : index
    %16 = vector.load %arg3[%c0_4, %c0_5] : memref<160x128xf32, #tpu.memory_space<vmem>>, vector<160x128xf32>
    %cst_6 = arith.constant dense<0.000000e+00> : vector<16x128xf32>
    %17 = tpu.matmul %15, %16, %cst_6 {dimension_numbers = #tpu.dot_dimension_numbers<[1], [0], [0], [1], [0, 0, 1, 1], [], []>} : vector<16x160xf32>, vector<160x128xf32>, vector<16x128xf32> -> vector<16x128xf32>
    %c0_7 = arith.constant 0 : index
    %c0_8 = arith.constant 0 : index
    %18 = vector.load %arg4[%c0_7, %c0_8] : memref<16x128xf32, #tpu.memory_space<vmem>>, vector<16x128xf32>
    tpu.vector_store %arg4[%c0_7, %c0_8], %17 {strides = array<i32>} : memref<16x128xf32, #tpu.memory_space<vmem>>, vector<16x128xf32>,
    return
  }
  func.func @transform_0(%arg0: i32, %arg1: i32) -> (i32, i32) {
    %c0_i32 = arith.constant 0 : i32
    %c0_i32_0 = arith.constant 0 : i32
    return %arg0, %c0_i32 : i32, i32
  }
  func.func @transform_1(%arg0: i32, %arg1: i32) -> (i32, i32) {
    %c0_i32 = arith.constant 0 : i32
    %c0_i32_0 = arith.constant 0 : i32
    return %c0_i32, %arg1 : i32, i32
  }
  func.func @transform_2(%arg0: i32, %arg1: i32) -> (i32, i32) {
    %c0_i32 = arith.constant 0 : i32
    return %arg0, %arg1 : i32, i32
  }
}

</mosaic_0001>

<bundles_post_ra>
// kernel: tpu_custom_call.1
= control target key start
LH: loop header
LB: loop body
LE: loop exit
PB: predicated region body
PF: predicated region fallthrough
CT: control target
= control target key end

     0   :  { %7 = vsyncpa [#allocation3], 0  ;;  %s459_s0 = inlined_call_operand.hbm [shape: f32[16,32], index: 0, kind: input, shape index: {}]   ;;  %s460_s1 = inlined_call_operand.hbm [shape: f32[160,128], index: 1, kind: input, shape index: {}]   ;;  %s461_s2 = inlined_call_operand.hbm [shape: f32[16,128], index: 2, kind: output, shape index: {}]  }
   0x1   :  { %8 = vsyncpa [#allocation6], 0 }
   0x2   :  { %9 = vsyncpa [#allocation4], 0  ;;  %s366_s9 = smov [#allocation2]   ;;  %s294_s13 = scalar_lea.hbm %s459_s0, 256 }
   0x3   :  { %s15_s10 = sshll.u32 %s366_s9, 4  ;;  %p295_p0 = scmp.ne.s32.totalorder %s459_s0, %s294_s13  ;;  %s16_s10 = int_to_ptr.vmem [resolvable:$true] %s15_s10 }
   0x4   :  { %p298_p1 = scmp.lt.u32.totalorder %s294_s13, %s459_s0 }
   0x6   :  { %p300_p2 = pnand %p298_p1, %p295_p0 }
   0x8   :  { %303 = shalt.err (!%p300_p2)
}
   0x9   :  { %s304_s18 = scalar_lea.vmem %s16_s10, 256  ;;  %p309_p4 = scmp.lt.s32.totalorder %s16_s10, %s16_s10 }
   0xa   :  { %p305_p3 = scmp.ne.s32.totalorder %s16_s10, %s304_s18  ;;  %p310_p5 = scmp.lt.s32.totalorder %s304_s18, %s304_s18 }
   0xc   :  { %p311_p6 = por %p310_p5, %p309_p4 }
   0xe   :  { %p312_p7 = pnand %p311_p6, %p305_p3 }
  0x10   :  { %315 = shalt.err (!%p312_p7)
}
  0x11   :  { %s367_s19 = smov 128   ;;  %s368_s20 = smov 8  }
  0x12   :  { %21 = dma.hbm_to_vmem [thread:$0]  %s459_s0, 256, %s16_s10, [#allocation3], %s367_s19, %s367_s19, %s368_s20  }
  0x13   :  { %s369_s23 = smov [#allocation5]   ;;  %s316_s27 = scalar_lea.hbm %s460_s1, 2560 }
  0x14   :  { %s27_s24 = sshll.u32 %s369_s23, 4  ;;  %p317_p8 = scmp.ne.s32.totalorder %s460_s1, %s316_s27  ;;  %s28_s24 = int_to_ptr.vmem [resolvable:$true] %s27_s24 }
  0x15   :  { %p320_p9 = scmp.lt.u32.totalorder %s316_s27, %s460_s1 }
  0x17   :  { %p322_p10 = pnand %p320_p9, %p317_p8 }
  0x19   :  { %325 = shalt.err (!%p322_p10)
}
  0x1a   :  { %s326_s4 = scalar_lea.vmem %s28_s24, 2560  ;;  %p331_p12 = scmp.lt.s32.totalorder %s28_s24, %s28_s24 }
  0x1b   :  { %p327_p11 = scmp.ne.s32.totalorder %s28_s24, %s326_s4  ;;  %p332_p13 = scmp.lt.s32.totalorder %s326_s4, %s326_s4 }
  0x1d   :  { %p333_p0 = por %p332_p13, %p331_p12 }
  0x1f   :  { %p334_p1 = pnand %p333_p0, %p327_p11 }
  0x21   :  { %337 = shalt.err (!%p334_p1)
}
  0x22   :  { %33 = dma.hbm_to_vmem [thread:$0]  %s460_s1, 2560, %s28_s24, [#allocation6], %s367_s19, %s367_s19, %s368_s20  }
  0x23   :  { %360 = dma.done.wait [#allocation3], 256  }
  0x24   :  { %361 = vsyncadd [#allocation3], 4294967040 }
  0x25   :  { %362 = dma.done.wait [#allocation6], 2560  }
  0x26   :  { %363 = vsyncadd [#allocation6], 4294964736  ;;  %v370_v0 = vmov 0.0|0.0   ;;  %v40_v1 = vld [vmem:[#allocation2] sm:$0xff]  ;;  %v41_v2 = vld [vmem:[#allocation2 + $0x8] sm:$0xff]  ;;  %s371_s1 = smov 32  }
  0x27   :  { %216 = vmatprep.subr.bf16.mxu0 %v370_v0  ;;  %246 = vmatprep.subr.bf16.mxu1 %v370_v0  ;;  %v91_v3 = vld [vmem:[#allocation5] sm:$0xff]  ;;  %290 = vtanh.f32 %v40_v1  ;;  %v92_v4 = vld [vmem:[#allocation5 + $0x8] sm:$0xff]  ;;  %v93_v5 = vld [vmem:[#allocation5 + $0x10] sm:$0xff]  ;;  %s372_s6 = smov 64   ;;  %s373_s7 = smov 96   ;;  %vm82_vm0 = vcmask 261120  }
  0x28   :  { %v94_v6 = vld [vmem:[#allocation5 + $0x18] sm:$0xff]  ;;  %292 = vtanh.f32 %v41_v2  ;;  %v217_v7 = vpack.c.bf16 %v92_v4, %v91_v3  ;;  %v95_v9 = vld [vmem:[#allocation5 + $0x20] sm:$0xff]  ;;  %v96_v10 = vld [vmem:[#allocation5 + $0x28] sm:$0xff]  ;;  %vm85_vm1 = vcmask 523264   ;;  %vm88_vm2 = vcmask 785408   ;;  %s374_s8 = smov [#allocation7]  }
  0x29   :  { %v220_v8 = vpack.c.bf16 %v94_v6, %v93_v5  ;;  %v223_v11 = vpack.c.bf16 %v96_v10, %v95_v9  ;;  %v97_v12 = vld [vmem:[#allocation5 + $0x30] sm:$0xff]  ;;  %v98_v13 = vld [vmem:[#allocation5 + $0x38] sm:$0xff]  ;;  %v99_v20 = vld [vmem:[#allocation5 + $0x40] sm:$0xff]  ;;  %s199_s9 = sshll.u32 %s374_s8, 4  ;;  %s200_s9 = int_to_ptr.vmem [resolvable:$true] %s199_s9 }
  0x2a   :  { %218 = vmatpush1.bf16.msra.mxu0 %v217_v7  ;;  %256 = vmatpush1.bf16.msra.mxu1 %v217_v7  ;;  %v226_v17 = vpack.c.bf16 %v98_v13, %v97_v12  ;;  %v100_v21 = vld [vmem:[#allocation5 + $0x48] sm:$0xff]  ;;  %v101_v27 = vld [vmem:[#allocation5 + $0x50] sm:$0xff]  ;;  %v102_v28 = vld [vmem:[#allocation5 + $0x58] sm:$0xff]  ;;  %s338_s10 = scalar_lea.vmem %s200_s9, 256  ;;  %p343_p3 = scmp.lt.s32.totalorder %s200_s9, %s200_s9 }
  0x2b   :  { %219 = vmatprep.subr.bf16.mxu0 %v370_v0  ;;  %247 = vmatprep.subr.bf16.mxu1 %v370_v0  ;;  %v229_v25 = vpack.c.bf16 %v100_v21, %v99_v20  ;;  %v232_v33 = vpack.c.bf16 %v102_v28, %v101_v27  ;;  %v103_v35 = vld [vmem:[#allocation5 + $0x60] sm:$0xff]  ;;  %v104_v36 = vld [vmem:[#allocation5 + $0x68] sm:$0xff]  ;;  %v105_v42 = vld [vmem:[#allocation5 + $0x70] sm:$0xff]  ;;  %p339_p2 = scmp.ne.s32.totalorder %s200_s9, %s338_s10  ;;  %p344_p4 = scmp.lt.s32.totalorder %s338_s10, %s338_s10 }
  0x2c   :  { %v235_v40 = vpack.c.bf16 %v104_v36, %v103_v35  ;;  %v106_v43 = vld [vmem:[#allocation5 + $0x78] sm:$0xff]  ;;  %v107_v46 = vld [vmem:[#allocation5 + $0x80] sm:$0xff]  ;;  %v108_v47 = vld [vmem:[#allocation5 + $0x88] sm:$0xff] }
  0x2d   :  { %v238_v45 = vpack.c.bf16 %v106_v43, %v105_v42  ;;  %v241_v48 = vpack.c.bf16 %v108_v47, %v107_v46  ;;  %v109_v49 = vld [vmem:[#allocation5 + $0x90] sm:$0xff]  ;;  %v110_v50 = vld [vmem:[#allocation5 + $0x98] sm:$0xff]  ;;  %p345_p5 = por %p344_p4, %p343_p3 }
  0x2e   :  { %221 = vmatpush1.bf16.msra.mxu0 %v220_v8  ;;  %257 = vmatpush1.bf16.msra.mxu1 %v220_v8  ;;  %v244_v51 = vpack.c.bf16 %v110_v50, %v109_v49 }
  0x2f   :  { %222 = vmatprep.subr.bf16.mxu0 %v370_v0  ;;  %248 = vmatprep.subr.bf16.mxu1 %v370_v0  ;;  %p346_p6 = pnand %p345_p5, %p339_p2 }
  0x31   :  { %v291_v14 = vpop.eup %290 }
  0x32   :  { %v293_v15 = vpop.eup %292  ;;  %v44_v16 = vmul.f32 2.0, %v291_v14  ;;  %224 = vmatpush1.bf16.msra.mxu0 %v223_v11  ;;  %258 = vmatpush1.bf16.msra.mxu1 %v223_v11 }
  0x33   :  { %v275_v18 = vpack.i.bf16 %v293_v15, %v291_v14  ;;  %v45_v19 = vmul.f32 2.0, %v293_v15  ;;  %225 = vmatprep.subr.bf16.mxu0 %v370_v0  ;;  %249 = vmatprep.subr.bf16.mxu1 %v370_v0 }
  0x34   :  { %v46_v22 = vmul.f32 %v291_v14, %v44_v16 }
  0x35   :  { %276 = vrot.lane.b32.xlu0 %v275_v18, %s371_s1  ;;  %v47_v23 = vmul.f32 %v293_v15, %v45_v19 }
  0x36   :  { %v212_v24 = vadd.f32 -1.0, %v46_v22  ;;  %227 = vmatpush1.bf16.msra.mxu0 %v226_v17  ;;  %259 = vmatpush1.bf16.msra.mxu1 %v226_v17 }
  0x37   :  { %v213_v26 = vadd.f32 -1.0, %v47_v23  ;;  %228 = vmatprep.subr.bf16.mxu0 %v370_v0  ;;  %250 = vmatprep.subr.bf16.mxu1 %v370_v0 }
  0x38   :  { %v50_v29 = vmul.f32 %v212_v24, %v44_v16 }
  0x39   :  { %v280_v30 = vpack.i.bf16 %v213_v26, %v212_v24  ;;  %v51_v31 = vmul.f32 %v213_v26, %v45_v19 }
  0x3a   :  { %v52_v32 = vsub.f32 %v50_v29, %v291_v14  ;;  %230 = vmatpush1.bf16.msra.mxu0 %v229_v25  ;;  %260 = vmatpush1.bf16.msra.mxu1 %v229_v25 }
  0x3b   :  { %281 = vrot.lane.b32.xlu0 %v280_v30, %s372_s6  ;;  %v53_v34 = vsub.f32 %v51_v31, %v293_v15  ;;  %231 = vmatprep.subr.bf16.mxu0 %v370_v0 }
  0x3c   :  { %251 = vmatprep.subr.bf16.mxu1 %v370_v0  ;;  %v54_v37 = vmul.f32 %v52_v32, %v44_v16 }
  0x3d   :  { %v285_v38 = vpack.i.bf16 %v53_v34, %v52_v32  ;;  %v55_v39 = vmul.f32 %v53_v34, %v45_v19 }
  0x3e   :  { %233 = vmatpush1.bf16.msra.mxu0 %v232_v33  ;;  %261 = vmatpush1.bf16.msra.mxu1 %v232_v33  ;;  %v56_v41 = vsub.f32 %v54_v37, %v212_v24 }
  0x3f   :  { %286 = vrot.lane.b32.xlu1 %v285_v38, %s373_s7  ;;  %234 = vmatprep.subr.bf16.mxu0 %v370_v0  ;;  %v57_v44 = vsub.f32 %v55_v39, %v213_v26 }
  0x40   :  { %252 = vmatprep.subr.bf16.mxu1 %v370_v0  ;;  %214 = vmatprep.mubr.msk.f32.mxu0 %vm82_vm0, %v56_v41 }
  0x41   :  { %215 = vmatprep.mubr.msk.f32.mxu1 %vm82_vm0, %v57_v44 }
  0x42   :  { %236 = vmatpush1.bf16.msra.mxu0 %v235_v40  ;;  %262 = vmatpush1.bf16.msra.mxu1 %v235_v40 }
  0x43   :  { %237 = vmatprep.subr.bf16.mxu0 %v370_v0  ;;  %253 = vmatprep.subr.bf16.mxu1 %v370_v0 }
  0x46   :  { %239 = vmatpush1.bf16.msra.mxu0 %v238_v45  ;;  %263 = vmatpush1.bf16.msra.mxu1 %v238_v45 }
  0x47   :  { %240 = vmatprep.subr.bf16.mxu0 %v370_v0  ;;  %254 = vmatprep.subr.bf16.mxu1 %v370_v0 }
  0x4a   :  { %242 = vmatpush1.bf16.msra.mxu0 %v241_v48  ;;  %264 = vmatpush1.bf16.msra.mxu1 %v241_v48 }
  0x4b   :  { %243 = vmatprep.subr.bf16.mxu0 %v370_v0  ;;  %255 = vmatprep.subr.bf16.mxu1 %v370_v0 }
  0x4e   :  { %245 = vmatpush1.bf16.msra.mxu0 %v244_v51  ;;  %265 = vmatpush1.bf16.msra.mxu1 %v244_v51 }
  0xa7   :  { %v277_v52 = vpop.permute.xlu0 %276 }
  0xa8   :  { %v279_v53 = vunpack.i.h.bf16 %v277_v52  ;;  %v278_v54 = vunpack.i.l.bf16 %v277_v52 }
  0xaa   :  { %v83_v58 = vsel %vm82_vm0, 1.0, %v278_v54  ;;  %v84_v59 = vsel %vm82_vm0, 1.0, %v279_v53 }
  0xad   :  { %v282_v55 = vpop.permute.xlu0 %281 }
  0xae   :  { %v284_v56 = vunpack.i.h.bf16 %v282_v55  ;;  %v283_v57 = vunpack.i.l.bf16 %v282_v55 }
  0xb0   :  { %v86_v63 = vsel %vm85_vm1, %v83_v58, %v283_v57  ;;  %v87_v1 = vsel %vm85_vm1, %v84_v59, %v284_v56 }
  0xb1   :  { %v287_v60 = vpop.permute.xlu1 %286 }
  0xb2   :  { %v289_v61 = vunpack.i.h.bf16 %v287_v60  ;;  %v288_v62 = vunpack.i.l.bf16 %v287_v60 }
  0xb4   :  { %v89_v0 = vsel %vm88_vm2, %v86_v63, %v288_v62  ;;  %v90_v2 = vsel %vm88_vm2, %v87_v1, %v289_v61 }
  0xb5   :  { %182 = vmatmul.mubr.f32.vlgmr.msra.gmra.mrb[0].mxu0 %v89_v0  ;;  %187 = vmatmul.mubr.f32.vlgmr.msra.gmra.mrb[0].mxu1 %v90_v2 }
 0x188   :  { %v183_v3 = vpop.f32.mrb[0].mxu0  ;;  %v188_v4 = vpop.f32.mrb[0].mxu1 }
 0x189   :  { %192 = vst [vmem:[#allocation7] sm:$0xff] %v183_v3  ;;  %193 = vst [vmem:[#allocation7 + $0x8] sm:$0xff] %v188_v4  ;;  %v185_v5 = vpop.f32.mrb[1].mxu0  ;;  %v190_v6 = vpop.f32.mrb[1].mxu1 }
 0x18a   :  { %349 = shalt.err (!%p346_p6)
}
 0x18b   :  { %s350_s13 = scalar_lea.hbm %s461_s2, 256 }
 0x18c   :  { %p351_p7 = scmp.ne.s32.totalorder %s461_s2, %s350_s13  ;;  %p354_p8 = scmp.lt.u32.totalorder %s350_s13, %s461_s2 }
 0x18e   :  { %p356_p9 = pnand %p354_p8, %p351_p7 }
 0x190   :  { %359 = shalt.err (!%p356_p9)
}
 0x191   :  { %205 = dma.vmem_to_hbm [thread:$0]  %s200_s9, 256, %s461_s2, [#allocation4], %s367_s19, %s367_s19, %s368_s20  }
 0x192   :  { %364 = dma.done.wait [#allocation4], 256  }
 0x193   :  { %365 = vsyncadd [#allocation4], 4294967040 }
 0x194   :  { %209 = vsyncpa [#allocation3], 1 }
 0x195   :  { %210 = vsyncpa [#allocation6], 1 }
 0x196   :  { %211 = vsyncpa [#allocation4], 1 }

</bundles_post_ra>
